<compile_context>
chip_gen: v6e
topology: v6e:2x2x1
jax: 0.10.0
libtpu: 0.0.40
codegen_flags: <defaults>
</compile_context>

<pallas_src>
import jax
import jax.numpy as jnp
from jax.experimental import pallas as pl
from jax.experimental.pallas import tpu as pltpu

ALPHA = 0.1
BETA = 0.1
GAMMA = 0.1
EPS = 1e-9

# scratch layout: [0]=sum_t, [1]=sum_t^2, then per estimate k: [2+3k]=sum_e,
# [3+3k]=sum_e^2, [4+3k]=sum_e*t
_N_STATS = 2 + 3 * 3


def _make_kernel(total_t, training):
    t_len = float(total_t)
    weights = (1.0 - ALPHA - BETA, ALPHA, BETA)

    def _accumulate(acc_ref, tgt_ref, est_refs):
        t = tgt_ref[...].astype(jnp.float32)
        acc_ref[0] += jnp.sum(t, axis=-1, keepdims=True)
        acc_ref[1] += jnp.sum(t * t, axis=-1, keepdims=True)
        for k, e_ref in enumerate(est_refs):
            e = e_ref[...].astype(jnp.float32)
            base = 2 + 3 * k
            acc_ref[base + 0] += jnp.sum(e, axis=-1, keepdims=True)
            acc_ref[base + 1] += jnp.sum(e * e, axis=-1, keepdims=True)
            acc_ref[base + 2] += jnp.sum(e * t, axis=-1, keepdims=True)

    def _sisdr_from_stats(sum_t, t_en, s_e, s_e2, s_et):
        # Centered stats: dot = <e-ē, t-t̄>, e_en = ||e-ē||².
        # NOTE: Σx² - (Σx)²/T in f32 can lose precision for very long T on
        # near-silent rows; clamped at 0 below.
        dot = s_et - s_e * sum_t / t_len
        e_en = jnp.maximum(s_e2 - s_e * s_e / t_len, 0.0)
        scale = dot / (t_en + EPS)                   # projection coefficient
        num2 = jnp.maximum(scale * scale * t_en, 0.0)          # ||s_target||²
        den2 = jnp.maximum(e_en - 2.0 * scale * dot + num2, 0.0)  # ||e-s_t||²
        num = jnp.sqrt(num2)
        den = jnp.sqrt(den2)
        return 20.0 * jnp.log10(num / (den + EPS) + EPS)       # [B_tile, 1]

    def _finalize_sisdr(acc_ref, out_si_ref):
        sum_t = acc_ref[0]
        t_en = jnp.maximum(acc_ref[1] - sum_t * sum_t / t_len, 0.0)
        si = jnp.zeros_like(sum_t)
        for k, w in enumerate(weights):
            base = 2 + 3 * k
            si = si + w * _sisdr_from_stats(sum_t, t_en, acc_ref[base + 0],
                                            acc_ref[base + 1],
                                            acc_ref[base + 2])
        out_si_ref[...] = si                                    # [B_tile, 1]

    if training:
        def kernel(s1_ref, s2_ref, s3_ref, tgt_ref, logits_ref, spk_ref,
                   out_si_ref, out_ce_ref, acc_ref):
            j = pl.program_id(1)

            @pl.when(j == 0)
            def _init():
                acc_ref[...] = jnp.zeros_like(acc_ref)

            _accumulate(acc_ref, tgt_ref, (s1_ref, s2_ref, s3_ref))

            @pl.when(j == pl.num_programs(1) - 1)
            def _finalize():
                _finalize_sisdr(acc_ref, out_si_ref)
                # Per-row cross-entropy: logsumexp(logits) - logits[speaker].
                logits = logits_ref[...].astype(jnp.float32)    # [B_tile, C]
                spk = spk_ref[...]                              # [B_tile, 1]
                m = jnp.max(logits, axis=-1, keepdims=True)
                lse = jnp.log(jnp.sum(jnp.exp(logits - m), axis=-1,
                                      keepdims=True)) + m
                col = jax.lax.broadcasted_iota(jnp.int32, logits.shape, 1)
                picked = jnp.sum(jnp.where(col == spk, logits, 0.0),
                                 axis=-1, keepdims=True)
                out_ce_ref[...] = lse - picked

        return kernel

    def kernel_eval(s1_ref, s2_ref, s3_ref, tgt_ref, out_si_ref, acc_ref):
        j = pl.program_id(1)

        @pl.when(j == 0)
        def _init():
            acc_ref[...] = jnp.zeros_like(acc_ref)

        _accumulate(acc_ref, tgt_ref, (s1_ref, s2_ref, s3_ref))

        @pl.when(j == pl.num_programs(1) - 1)
        def _finalize():
            _finalize_sisdr(acc_ref, out_si_ref)

    return kernel_eval


def _pick_tile(dim, candidates):
    for c in candidates:
        if dim % c == 0:
            return c
    return dim  # fall back to full extent (valid: equals the array dim)


def multi_loss(ests, audio_target, logits, speaker_id, training=True):
    """ests: tuple of three [B, T] arrays; returns scalar float32 loss."""
    s1, s2, s3 = ests
    b, t = audio_target.shape

    # Lane-dense time tiles (>=128, prefer 512-2048); modest batch tiles so
    # v7x's 64 MiB VMEM is never a constraint and batch blocks shard across
    # megacore TCs.  4 inputs x 2 buffers x (8 x 2048 x 4B) ~= 512 KiB.
    b_tile = _pick_tile(b, (8, 16, 32))
    t_tile = _pick_tile(t, (2048, 1024, 512, 256, 128))
    # TODO(synk): pad ragged T (not a multiple of 128) instead of falling back
    # to a single full-length time block.
    grid = (b // b_tile, t // t_tile)

    wav_spec = pl.BlockSpec((b_tile, t_tile), lambda i, j: (i, j))
    row_spec = pl.BlockSpec((b_tile, 1), lambda i, j: (i, 0))
    scratch = [pltpu.VMEM((_N_STATS, b_tile, 1), jnp.float32)]
    cparams = pltpu.CompilerParams(
        dimension_semantics=("parallel", "arbitrary"))

    kernel = _make_kernel(t, training)

    if training:
        c = logits.shape[1]
        logits_spec = pl.BlockSpec((b_tile, c), lambda i, j: (i, 0))
        spk2d = speaker_id.reshape(b, 1).astype(jnp.int32)
        out_si, out_ce = pl.pallas_call(
            kernel,
            out_shape=(jax.ShapeDtypeStruct((b, 1), jnp.float32),
                       jax.ShapeDtypeStruct((b, 1), jnp.float32)),
            grid_spec=pltpu.PrefetchScalarGridSpec(
                num_scalar_prefetch=0,
                grid=grid,
                in_specs=[wav_spec, wav_spec, wav_spec, wav_spec,
                          logits_spec, row_spec],
                out_specs=(row_spec, row_spec),
                scratch_shapes=scratch),
            compiler_params=cparams,
        )(s1, s2, s3, audio_target, logits, spk2d)
        # Tiny epilogue (B-element means + scalar mix) in plain JAX so the
        # batch grid axis stays parallel (megacore-safe), and so the division
        # uses the full batch size regardless of tiling.
        sisdr_loss = -jnp.mean(out_si)
        ce = jnp.mean(out_ce)
        return (1.0 - GAMMA) * sisdr_loss + GAMMA * ce

    out_si = pl.pallas_call(
        kernel,
        out_shape=jax.ShapeDtypeStruct((b, 1), jnp.float32),
        grid_spec=pltpu.PrefetchScalarGridSpec(
            num_scalar_prefetch=0,
            grid=grid,
            in_specs=[wav_spec, wav_spec, wav_spec, wav_spec],
            out_specs=row_spec,
            scratch_shapes=scratch),
        compiler_params=cparams,
    )(s1, s2, s3, audio_target)
    return -jnp.mean(out_si)


def _reference(ests, audio_target, logits, speaker_id, training=True):
    # Pure-JAX reference matching the PyTorch module semantics.
    tgt = audio_target - jnp.mean(audio_target, axis=-1, keepdims=True)
    t_energy = jnp.sum(tgt * tgt, axis=-1, keepdims=True)

    def sisdr(e):
        e = e - jnp.mean(e, axis=-1, keepdims=True)
        dot = jnp.sum(e * tgt, axis=-1, keepdims=True)
        s_t = dot * tgt / (t_energy + EPS)
        e_n = e - s_t
        return 20.0 * jnp.log10(
            jnp.linalg.norm(s_t, axis=-1)
            / (jnp.linalg.norm(e_n, axis=-1) + EPS) + EPS)

    s1, s2, s3 = ests
    si = (1 - ALPHA - BETA) * sisdr(s1) + ALPHA * sisdr(s2) + BETA * sisdr(s3)
    sisdr_loss = -jnp.mean(si)
    if not training:
        return sisdr_loss
    logp = jax.nn.log_softmax(logits, axis=-1)
    ce = -jnp.mean(jnp.take_along_axis(logp, speaker_id[:, None], axis=-1))
    return (1 - GAMMA) * sisdr_loss + GAMMA * ce


if __name__ == "__main__":
    key = jax.random.PRNGKey(0)
    # Small but non-degenerate: B=16 -> 2 batch blocks (B_tile=8),
    # T=640 -> 5 time blocks (T_tile=128) so the streaming accumulator and
    # pl.when finalize paths are actually exercised.
    B, T, C = 16, 640, 16
    k1, k2, k3, k4, k5, k6 = jax.random.split(key, 6)

    audio_target = jax.random.normal(k1, (B, T), jnp.float32)
    s1 = audio_target + 0.10 * jax.random.normal(k2, (B, T), jnp.float32)
    s2 = audio_target + 0.20 * jax.random.normal(k3, (B, T), jnp.float32)
    s3 = audio_target + 0.30 * jax.random.normal(k4, (B, T), jnp.float32)
    logits = jax.random.normal(k5, (B, C), jnp.float32)
    speaker_id = jax.random.randint(k6, (B,), 0, C, jnp.int32)

    loss = multi_loss((s1, s2, s3), audio_target, logits, speaker_id,
                      training=True)
    loss = jax.block_until_ready(loss)
    ref = _reference((s1, s2, s3), audio_target, logits, speaker_id,
                     training=True)
    assert jnp.allclose(loss, ref, rtol=1e-3, atol=1e-3), (loss, ref)

    # eval-mode path (SI-SDR only, no logits/speaker DMA)
    loss_eval = jax.block_until_ready(
        multi_loss((s1, s2, s3), audio_target, logits, speaker_id,
                   training=False))
    ref_eval = _reference((s1, s2, s3), audio_target, logits, speaker_id,
                          training=False)
    assert jnp.allclose(loss_eval, ref_eval, rtol=1e-3, atol=1e-3), (
        loss_eval, ref_eval)

    print("KERNEL_OK")
</pallas_src>

<mosaic_0001>
module attributes {stable_mosaic.version = 11 : i64} {
  func.func @kernel(%arg0: i32, %arg1: i32, %arg2: memref<8x128xf32, #tpu.memory_space<vmem>>, %arg3: memref<8x128xf32, #tpu.memory_space<vmem>>, %arg4: memref<8x128xf32, #tpu.memory_space<vmem>>, %arg5: memref<8x128xf32, #tpu.memory_space<vmem>>, %arg6: memref<8x16xf32, #tpu.memory_space<vmem>>, %arg7: memref<8x1xi32, #tpu.memory_space<vmem>>, %arg8: memref<8x1xf32, #tpu.memory_space<vmem>>, %arg9: memref<8x1xf32, #tpu.memory_space<vmem>>, %arg10: memref<11x8x1xf32, #tpu.memory_space<vmem>>) attributes {dimension_semantics = [#tpu.dimension_semantics<parallel>, #tpu.dimension_semantics<arbitrary>], iteration_bounds = array<i64: 2, 5>, scalar_prefetch = 0 : i64, scratch_operands = 1 : i64, tpu.core_type = #tpu.core_type<tc>, window_params = [{transform_indices = @transform_0, window_bounds = array<i64: 8, 128>}, {transform_indices = @transform_1, window_bounds = array<i64: 8, 128>}, {transform_indices = @transform_2, window_bounds = array<i64: 8, 128>}, {transform_indices = @transform_3, window_bounds = array<i64: 8, 128>}, {transform_indices = @transform_4, window_bounds = array<i64: 8, 16>}, {transform_indices = @transform_5, window_bounds = array<i64: 8, 1>}, {transform_indices = @transform_6, window_bounds = array<i64: 8, 1>}, {transform_indices = @transform_7, window_bounds = array<i64: 8, 1>}]} {
    %c0_i32 = arith.constant 0 : i32
    %0 = arith.cmpi eq, %arg1, %c0_i32 : i32
    %1 = arith.extui %0 : i1 to i32
    %c0_i32_0 = arith.constant 0 : i32
    %2 = arith.cmpi ne, %1, %c0_i32_0 : i32
    scf.if %2 {
      %cst_75 = arith.constant 0.000000e+00 : f32
      %105 = vector.broadcast %cst_75 : f32 to vector<11x8x1xf32>
      %c0_76 = arith.constant 0 : index
      %c0_77 = arith.constant 0 : index
      %c0_78 = arith.constant 0 : index
      %106 = vector.load %arg10[%c0_76, %c0_77, %c0_78] : memref<11x8x1xf32, #tpu.memory_space<vmem>>, vector<11x8x1xf32>
      tpu.vector_store %arg10[%c0_76, %c0_77, %c0_78], %105 {strides = array<i32>} : memref<11x8x1xf32, #tpu.memory_space<vmem>>, vector<11x8x1xf32>,
    } else {
    }
    %c0 = arith.constant 0 : index
    %c0_1 = arith.constant 0 : index
    %3 = vector.load %arg5[%c0, %c0_1] : memref<8x128xf32, #tpu.memory_space<vmem>>, vector<8x128xf32>
    %c0_2 = arith.constant 0 : index
    %c0_3 = arith.constant 0 : index
    %c0_4 = arith.constant 0 : index
    %4 = vector.load %arg10[%c0_2, %c0_3, %c0_4] : memref<11x8x1xf32, #tpu.memory_space<vmem>>, vector<1x8x1xf32>
    %5 = vector.shape_cast %4 : vector<1x8x1xf32> to vector<8x1xf32>
    %cst = arith.constant dense<0.000000e+00> : vector<8xf32>
    %6 = vector.multi_reduction <add>, %3, %cst [1] : vector<8x128xf32> to vector<8xf32>
    %7 = vector.shape_cast %6 : vector<8xf32> to vector<8x1xf32>
    %8 = arith.addf %5, %7 : vector<8x1xf32>
    %c0_5 = arith.constant 0 : index
    %c0_6 = arith.constant 0 : index
    %c0_7 = arith.constant 0 : index
    %9 = vector.load %arg10[%c0_5, %c0_6, %c0_7] : memref<11x8x1xf32, #tpu.memory_space<vmem>>, vector<1x8x1xf32>
    %10 = vector.shape_cast %9 : vector<1x8x1xf32> to vector<8x1xf32>
    %11 = vector.shape_cast %8 : vector<8x1xf32> to vector<1x8x1xf32>
    tpu.vector_store %arg10[%c0_5, %c0_6, %c0_7], %11 {strides = array<i32>} : memref<11x8x1xf32, #tpu.memory_space<vmem>>, vector<1x8x1xf32>,
    %c1 = arith.constant 1 : index
    %c0_8 = arith.constant 0 : index
    %c0_9 = arith.constant 0 : index
    %12 = vector.load %arg10[%c1, %c0_8, %c0_9] : memref<11x8x1xf32, #tpu.memory_space<vmem>>, vector<1x8x1xf32>
    %13 = vector.shape_cast %12 : vector<1x8x1xf32> to vector<8x1xf32>
    %14 = arith.mulf %3, %3 : vector<8x128xf32>
    %cst_10 = arith.constant dense<0.000000e+00> : vector<8xf32>
    %15 = vector.multi_reduction <add>, %14, %cst_10 [1] : vector<8x128xf32> to vector<8xf32>
    %16 = vector.shape_cast %15 : vector<8xf32> to vector<8x1xf32>
    %17 = arith.addf %13, %16 : vector<8x1xf32>
    %c1_11 = arith.constant 1 : index
    %c0_12 = arith.constant 0 : index
    %c0_13 = arith.constant 0 : index
    %18 = vector.load %arg10[%c1_11, %c0_12, %c0_13] : memref<11x8x1xf32, #tpu.memory_space<vmem>>, vector<1x8x1xf32>
    %19 = vector.shape_cast %18 : vector<1x8x1xf32> to vector<8x1xf32>
    %20 = vector.shape_cast %17 : vector<8x1xf32> to vector<1x8x1xf32>
    tpu.vector_store %arg10[%c1_11, %c0_12, %c0_13], %20 {strides = array<i32>} : memref<11x8x1xf32, #tpu.memory_space<vmem>>, vector<1x8x1xf32>,
    %c0_14 = arith.constant 0 : index
    %c0_15 = arith.constant 0 : index
    %21 = vector.load %arg2[%c0_14, %c0_15] : memref<8x128xf32, #tpu.memory_space<vmem>>, vector<8x128xf32>
    %c2 = arith.constant 2 : index
    %c0_16 = arith.constant 0 : index
    %c0_17 = arith.constant 0 : index
    %22 = vector.load %arg10[%c2, %c0_16, %c0_17] : memref<11x8x1xf32, #tpu.memory_space<vmem>>, vector<1x8x1xf32>
    %23 = vector.shape_cast %22 : vector<1x8x1xf32> to vector<8x1xf32>
    %cst_18 = arith.constant dense<0.000000e+00> : vector<8xf32>
    %24 = vector.multi_reduction <add>, %21, %cst_18 [1] : vector<8x128xf32> to vector<8xf32>
    %25 = vector.shape_cast %24 : vector<8xf32> to vector<8x1xf32>
    %26 = arith.addf %23, %25 : vector<8x1xf32>
    %c2_19 = arith.constant 2 : index
    %c0_20 = arith.constant 0 : index
    %c0_21 = arith.constant 0 : index
    %27 = vector.load %arg10[%c2_19, %c0_20, %c0_21] : memref<11x8x1xf32, #tpu.memory_space<vmem>>, vector<1x8x1xf32>
    %28 = vector.shape_cast %27 : vector<1x8x1xf32> to vector<8x1xf32>
    %29 = vector.shape_cast %26 : vector<8x1xf32> to vector<1x8x1xf32>
    tpu.vector_store %arg10[%c2_19, %c0_20, %c0_21], %29 {strides = array<i32>} : memref<11x8x1xf32, #tpu.memory_space<vmem>>, vector<1x8x1xf32>,
    %c3 = arith.constant 3 : index
    %c0_22 = arith.constant 0 : index
    %c0_23 = arith.constant 0 : index
    %30 = vector.load %arg10[%c3, %c0_22, %c0_23] : memref<11x8x1xf32, #tpu.memory_space<vmem>>, vector<1x8x1xf32>
    %31 = vector.shape_cast %30 : vector<1x8x1xf32> to vector<8x1xf32>
    %32 = arith.mulf %21, %21 : vector<8x128xf32>
    %cst_24 = arith.constant dense<0.000000e+00> : vector<8xf32>
    %33 = vector.multi_reduction <add>, %32, %cst_24 [1] : vector<8x128xf32> to vector<8xf32>
    %34 = vector.shape_cast %33 : vector<8xf32> to vector<8x1xf32>
    %35 = arith.addf %31, %34 : vector<8x1xf32>
    %c3_25 = arith.constant 3 : index
    %c0_26 = arith.constant 0 : index
    %c0_27 = arith.constant 0 : index
    %36 = vector.load %arg10[%c3_25, %c0_26, %c0_27] : memref<11x8x1xf32, #tpu.memory_space<vmem>>, vector<1x8x1xf32>
    %37 = vector.shape_cast %36 : vector<1x8x1xf32> to vector<8x1xf32>
    %38 = vector.shape_cast %35 : vector<8x1xf32> to vector<1x8x1xf32>
    tpu.vector_store %arg10[%c3_25, %c0_26, %c0_27], %38 {strides = array<i32>} : memref<11x8x1xf32, #tpu.memory_space<vmem>>, vector<1x8x1xf32>,
    %c4 = arith.constant 4 : index
    %c0_28 = arith.constant 0 : index
    %c0_29 = arith.constant 0 : index
    %39 = vector.load %arg10[%c4, %c0_28, %c0_29] : memref<11x8x1xf32, #tpu.memory_space<vmem>>, vector<1x8x1xf32>
    %40 = vector.shape_cast %39 : vector<1x8x1xf32> to vector<8x1xf32>
    %41 = arith.mulf %21, %3 : vector<8x128xf32>
    %cst_30 = arith.constant dense<0.000000e+00> : vector<8xf32>
    %42 = vector.multi_reduction <add>, %41, %cst_30 [1] : vector<8x128xf32> to vector<8xf32>
    %43 = vector.shape_cast %42 : vector<8xf32> to vector<8x1xf32>
    %44 = arith.addf %40, %43 : vector<8x1xf32>
    %c4_31 = arith.constant 4 : index
    %c0_32 = arith.constant 0 : index
    %c0_33 = arith.constant 0 : index
    %45 = vector.load %arg10[%c4_31, %c0_32, %c0_33] : memref<11x8x1xf32, #tpu.memory_space<vmem>>, vector<1x8x1xf32>
    %46 = vector.shape_cast %45 : vector<1x8x1xf32> to vector<8x1xf32>
    %47 = vector.shape_cast %44 : vector<8x1xf32> to vector<1x8x1xf32>
    tpu.vector_store %arg10[%c4_31, %c0_32, %c0_33], %47 {strides = array<i32>} : memref<11x8x1xf32, #tpu.memory_space<vmem>>, vector<1x8x1xf32>,
    %c0_34 = arith.constant 0 : index
    %c0_35 = arith.constant 0 : index
    %48 = vector.load %arg3[%c0_34, %c0_35] : memref<8x128xf32, #tpu.memory_space<vmem>>, vector<8x128xf32>
    %c5 = arith.constant 5 : index
    %c0_36 = arith.constant 0 : index
    %c0_37 = arith.constant 0 : index
    %49 = vector.load %arg10[%c5, %c0_36, %c0_37] : memref<11x8x1xf32, #tpu.memory_space<vmem>>, vector<1x8x1xf32>
    %50 = vector.shape_cast %49 : vector<1x8x1xf32> to vector<8x1xf32>
    %cst_38 = arith.constant dense<0.000000e+00> : vector<8xf32>
    %51 = vector.multi_reduction <add>, %48, %cst_38 [1] : vector<8x128xf32> to vector<8xf32>
    %52 = vector.shape_cast %51 : vector<8xf32> to vector<8x1xf32>
    %53 = arith.addf %50, %52 : vector<8x1xf32>
    %c5_39 = arith.constant 5 : index
    %c0_40 = arith.constant 0 : index
    %c0_41 = arith.constant 0 : index
    %54 = vector.load %arg10[%c5_39, %c0_40, %c0_41] : memref<11x8x1xf32, #tpu.memory_space<vmem>>, vector<1x8x1xf32>
    %55 = vector.shape_cast %54 : vector<1x8x1xf32> to vector<8x1xf32>
    %56 = vector.shape_cast %53 : vector<8x1xf32> to vector<1x8x1xf32>
    tpu.vector_store %arg10[%c5_39, %c0_40, %c0_41], %56 {strides = array<i32>} : memref<11x8x1xf32, #tpu.memory_space<vmem>>, vector<1x8x1xf32>,
    %c6 = arith.constant 6 : index
    %c0_42 = arith.constant 0 : index
    %c0_43 = arith.constant 0 : index
    %57 = vector.load %arg10[%c6, %c0_42, %c0_43] : memref<11x8x1xf32, #tpu.memory_space<vmem>>, vector<1x8x1xf32>
    %58 = vector.shape_cast %57 : vector<1x8x1xf32> to vector<8x1xf32>
    %59 = arith.mulf %48, %48 : vector<8x128xf32>
    %cst_44 = arith.constant dense<0.000000e+00> : vector<8xf32>
    %60 = vector.multi_reduction <add>, %59, %cst_44 [1] : vector<8x128xf32> to vector<8xf32>
    %61 = vector.shape_cast %60 : vector<8xf32> to vector<8x1xf32>
    %62 = arith.addf %58, %61 : vector<8x1xf32>
    %c6_45 = arith.constant 6 : index
    %c0_46 = arith.constant 0 : index
    %c0_47 = arith.constant 0 : index
    %63 = vector.load %arg10[%c6_45, %c0_46, %c0_47] : memref<11x8x1xf32, #tpu.memory_space<vmem>>, vector<1x8x1xf32>
    %64 = vector.shape_cast %63 : vector<1x8x1xf32> to vector<8x1xf32>
    %65 = vector.shape_cast %62 : vector<8x1xf32> to vector<1x8x1xf32>
    tpu.vector_store %arg10[%c6_45, %c0_46, %c0_47], %65 {strides = array<i32>} : memref<11x8x1xf32, #tpu.memory_space<vmem>>, vector<1x8x1xf32>,
    %c7 = arith.constant 7 : index
    %c0_48 = arith.constant 0 : index
    %c0_49 = arith.constant 0 : index
    %66 = vector.load %arg10[%c7, %c0_48, %c0_49] : memref<11x8x1xf32, #tpu.memory_space<vmem>>, vector<1x8x1xf32>
    %67 = vector.shape_cast %66 : vector<1x8x1xf32> to vector<8x1xf32>
    %68 = arith.mulf %48, %3 : vector<8x128xf32>
    %cst_50 = arith.constant dense<0.000000e+00> : vector<8xf32>
    %69 = vector.multi_reduction <add>, %68, %cst_50 [1] : vector<8x128xf32> to vector<8xf32>
    %70 = vector.shape_cast %69 : vector<8xf32> to vector<8x1xf32>
    %71 = arith.addf %67, %70 : vector<8x1xf32>
    %c7_51 = arith.constant 7 : index
    %c0_52 = arith.constant 0 : index
    %c0_53 = arith.constant 0 : index
    %72 = vector.load %arg10[%c7_51, %c0_52, %c0_53] : memref<11x8x1xf32, #tpu.memory_space<vmem>>, vector<1x8x1xf32>
    %73 = vector.shape_cast %72 : vector<1x8x1xf32> to vector<8x1xf32>
    %74 = vector.shape_cast %71 : vector<8x1xf32> to vector<1x8x1xf32>
    tpu.vector_store %arg10[%c7_51, %c0_52, %c0_53], %74 {strides = array<i32>} : memref<11x8x1xf32, #tpu.memory_space<vmem>>, vector<1x8x1xf32>,
    %c0_54 = arith.constant 0 : index
    %c0_55 = arith.constant 0 : index
    %75 = vector.load %arg4[%c0_54, %c0_55] : memref<8x128xf32, #tpu.memory_space<vmem>>, vector<8x128xf32>
    %c8 = arith.constant 8 : index
    %c0_56 = arith.constant 0 : index
    %c0_57 = arith.constant 0 : index
    %76 = vector.load %arg10[%c8, %c0_56, %c0_57] : memref<11x8x1xf32, #tpu.memory_space<vmem>>, vector<1x8x1xf32>
    %77 = vector.shape_cast %76 : vector<1x8x1xf32> to vector<8x1xf32>
    %cst_58 = arith.constant dense<0.000000e+00> : vector<8xf32>
    %78 = vector.multi_reduction <add>, %75, %cst_58 [1] : vector<8x128xf32> to vector<8xf32>
    %79 = vector.shape_cast %78 : vector<8xf32> to vector<8x1xf32>
    %80 = arith.addf %77, %79 : vector<8x1xf32>
    %c8_59 = arith.constant 8 : index
    %c0_60 = arith.constant 0 : index
    %c0_61 = arith.constant 0 : index
    %81 = vector.load %arg10[%c8_59, %c0_60, %c0_61] : memref<11x8x1xf32, #tpu.memory_space<vmem>>, vector<1x8x1xf32>
    %82 = vector.shape_cast %81 : vector<1x8x1xf32> to vector<8x1xf32>
    %83 = vector.shape_cast %80 : vector<8x1xf32> to vector<1x8x1xf32>
    tpu.vector_store %arg10[%c8_59, %c0_60, %c0_61], %83 {strides = array<i32>} : memref<11x8x1xf32, #tpu.memory_space<vmem>>, vector<1x8x1xf32>,
    %c9 = arith.constant 9 : index
    %c0_62 = arith.constant 0 : index
    %c0_63 = arith.constant 0 : index
    %84 = vector.load %arg10[%c9, %c0_62, %c0_63] : memref<11x8x1xf32, #tpu.memory_space<vmem>>, vector<1x8x1xf32>
    %85 = vector.shape_cast %84 : vector<1x8x1xf32> to vector<8x1xf32>
    %86 = arith.mulf %75, %75 : vector<8x128xf32>
    %cst_64 = arith.constant dense<0.000000e+00> : vector<8xf32>
    %87 = vector.multi_reduction <add>, %86, %cst_64 [1] : vector<8x128xf32> to vector<8xf32>
    %88 = vector.shape_cast %87 : vector<8xf32> to vector<8x1xf32>
    %89 = arith.addf %85, %88 : vector<8x1xf32>
    %c9_65 = arith.constant 9 : index
    %c0_66 = arith.constant 0 : index
    %c0_67 = arith.constant 0 : index
    %90 = vector.load %arg10[%c9_65, %c0_66, %c0_67] : memref<11x8x1xf32, #tpu.memory_space<vmem>>, vector<1x8x1xf32>
    %91 = vector.shape_cast %90 : vector<1x8x1xf32> to vector<8x1xf32>
    %92 = vector.shape_cast %89 : vector<8x1xf32> to vector<1x8x1xf32>
    tpu.vector_store %arg10[%c9_65, %c0_66, %c0_67], %92 {strides = array<i32>} : memref<11x8x1xf32, #tpu.memory_space<vmem>>, vector<1x8x1xf32>,
    %c10 = arith.constant 10 : index
    %c0_68 = arith.constant 0 : index
    %c0_69 = arith.constant 0 : index
    %93 = vector.load %arg10[%c10, %c0_68, %c0_69] : memref<11x8x1xf32, #tpu.memory_space<vmem>>, vector<1x8x1xf32>
    %94 = vector.shape_cast %93 : vector<1x8x1xf32> to vector<8x1xf32>
    %95 = arith.mulf %75, %3 : vector<8x128xf32>
    %cst_70 = arith.constant dense<0.000000e+00> : vector<8xf32>
    %96 = vector.multi_reduction <add>, %95, %cst_70 [1] : vector<8x128xf32> to vector<8xf32>
    %97 = vector.shape_cast %96 : vector<8xf32> to vector<8x1xf32>
    %98 = arith.addf %94, %97 : vector<8x1xf32>
    %c10_71 = arith.constant 10 : index
    %c0_72 = arith.constant 0 : index
    %c0_73 = arith.constant 0 : index
    %99 = vector.load %arg10[%c10_71, %c0_72, %c0_73] : memref<11x8x1xf32, #tpu.memory_space<vmem>>, vector<1x8x1xf32>
    %100 = vector.shape_cast %99 : vector<1x8x1xf32> to vector<8x1xf32>
    %101 = vector.shape_cast %98 : vector<8x1xf32> to vector<1x8x1xf32>
    tpu.vector_store %arg10[%c10_71, %c0_72, %c0_73], %101 {strides = array<i32>} : memref<11x8x1xf32, #tpu.memory_space<vmem>>, vector<1x8x1xf32>,
    %c4_i32 = arith.constant 4 : i32
    %102 = arith.cmpi eq, %arg1, %c4_i32 : i32
    %103 = arith.extui %102 : i1 to i32
    %c0_i32_74 = arith.constant 0 : i32
    %104 = arith.cmpi ne, %103, %c0_i32_74 : i32
    scf.if %104 {
      %c0_75 = arith.constant 0 : index
      %c0_76 = arith.constant 0 : index
      %c0_77 = arith.constant 0 : index
      %105 = vector.load %arg10[%c0_75, %c0_76, %c0_77] : memref<11x8x1xf32, #tpu.memory_space<vmem>>, vector<1x8x1xf32>
      %106 = vector.shape_cast %105 : vector<1x8x1xf32> to vector<8x1xf32>
      %c1_78 = arith.constant 1 : index
      %c0_79 = arith.constant 0 : index
      %c0_80 = arith.constant 0 : index
      %107 = vector.load %arg10[%c1_78, %c0_79, %c0_80] : memref<11x8x1xf32, #tpu.memory_space<vmem>>, vector<1x8x1xf32>
      %108 = vector.shape_cast %107 : vector<1x8x1xf32> to vector<8x1xf32>
      %109 = arith.mulf %106, %106 : vector<8x1xf32>
      %cst_81 = arith.constant 6.400000e+02 : f32
      %110 = vector.broadcast %cst_81 : f32 to vector<8x1xf32>
      %111 = arith.divf %109, %110 : vector<8x1xf32>
      %112 = arith.subf %108, %111 : vector<8x1xf32>
      %cst_82 = arith.constant 0.000000e+00 : f32
      %113 = vector.broadcast %cst_82 : f32 to vector<8x1xf32>
      %114 = arith.maximumf %112, %113 : vector<8x1xf32>
      %cst_83 = arith.constant 0.000000e+00 : f32
      %115 = vector.broadcast %cst_83 : f32 to vector<8x1xf32>
      %c2_84 = arith.constant 2 : index
      %c0_85 = arith.constant 0 : index
      %c0_86 = arith.constant 0 : index
      %116 = vector.load %arg10[%c2_84, %c0_85, %c0_86] : memref<11x8x1xf32, #tpu.memory_space<vmem>>, vector<1x8x1xf32>
      %117 = vector.shape_cast %116 : vector<1x8x1xf32> to vector<8x1xf32>
      %c3_87 = arith.constant 3 : index
      %c0_88 = arith.constant 0 : index
      %c0_89 = arith.constant 0 : index
      %118 = vector.load %arg10[%c3_87, %c0_88, %c0_89] : memref<11x8x1xf32, #tpu.memory_space<vmem>>, vector<1x8x1xf32>
      %119 = vector.shape_cast %118 : vector<1x8x1xf32> to vector<8x1xf32>
      %c4_90 = arith.constant 4 : index
      %c0_91 = arith.constant 0 : index
      %c0_92 = arith.constant 0 : index
      %120 = vector.load %arg10[%c4_90, %c0_91, %c0_92] : memref<11x8x1xf32, #tpu.memory_space<vmem>>, vector<1x8x1xf32>
      %121 = vector.shape_cast %120 : vector<1x8x1xf32> to vector<8x1xf32>
      %122 = arith.mulf %117, %106 : vector<8x1xf32>
      %cst_93 = arith.constant 6.400000e+02 : f32
      %123 = vector.broadcast %cst_93 : f32 to vector<8x1xf32>
      %124 = arith.divf %122, %123 : vector<8x1xf32>
      %125 = arith.subf %121, %124 : vector<8x1xf32>
      %126 = arith.mulf %117, %117 : vector<8x1xf32>
      %cst_94 = arith.constant 6.400000e+02 : f32
      %127 = vector.broadcast %cst_94 : f32 to vector<8x1xf32>
      %128 = arith.divf %126, %127 : vector<8x1xf32>
      %129 = arith.subf %119, %128 : vector<8x1xf32>
      %cst_95 = arith.constant 0.000000e+00 : f32
      %130 = vector.broadcast %cst_95 : f32 to vector<8x1xf32>
      %131 = arith.maximumf %129, %130 : vector<8x1xf32>
      %cst_96 = arith.constant 9.99999971E-10 : f32
      %132 = vector.broadcast %cst_96 : f32 to vector<8x1xf32>
      %133 = arith.addf %114, %132 : vector<8x1xf32>
      %134 = arith.divf %125, %133 : vector<8x1xf32>
      %135 = arith.mulf %134, %134 : vector<8x1xf32>
      %136 = arith.mulf %135, %114 : vector<8x1xf32>
      %cst_97 = arith.constant 0.000000e+00 : f32
      %137 = vector.broadcast %cst_97 : f32 to vector<8x1xf32>
      %138 = arith.maximumf %136, %137 : vector<8x1xf32>
      %cst_98 = arith.constant 2.000000e+00 : f32
      %139 = vector.broadcast %cst_98 : f32 to vector<8x1xf32>
      %140 = arith.mulf %139, %134 : vector<8x1xf32>
      %141 = arith.mulf %140, %125 : vector<8x1xf32>
      %142 = arith.subf %131, %141 : vector<8x1xf32>
      %143 = arith.addf %142, %138 : vector<8x1xf32>
      %cst_99 = arith.constant 0.000000e+00 : f32
      %144 = vector.broadcast %cst_99 : f32 to vector<8x1xf32>
      %145 = arith.maximumf %143, %144 : vector<8x1xf32>
      %146 = math.sqrt %138 : vector<8x1xf32>
      %147 = math.sqrt %145 : vector<8x1xf32>
      %cst_100 = arith.constant 9.99999971E-10 : f32
      %148 = vector.broadcast %cst_100 : f32 to vector<8x1xf32>
      %149 = arith.addf %147, %148 : vector<8x1xf32>
      %150 = arith.divf %146, %149 : vector<8x1xf32>
      %cst_101 = arith.constant 9.99999971E-10 : f32
      %151 = vector.broadcast %cst_101 : f32 to vector<8x1xf32>
      %152 = arith.addf %150, %151 : vector<8x1xf32>
      %153 = math.log %152 : vector<8x1xf32>
      %cst_102 = arith.constant 0.434294492 : f32
      %154 = vector.broadcast %cst_102 : f32 to vector<8x1xf32>
      %155 = arith.mulf %153, %154 : vector<8x1xf32>
      %cst_103 = arith.constant 2.000000e+01 : f32
      %156 = vector.broadcast %cst_103 : f32 to vector<8x1xf32>
      %157 = arith.mulf %156, %155 : vector<8x1xf32>
      %cst_104 = arith.constant 8.000000e-01 : f32
      %158 = vector.broadcast %cst_104 : f32 to vector<8x1xf32>
      %159 = arith.mulf %158, %157 : vector<8x1xf32>
      %160 = arith.addf %115, %159 : vector<8x1xf32>
      %c5_105 = arith.constant 5 : index
      %c0_106 = arith.constant 0 : index
      %c0_107 = arith.constant 0 : index
      %161 = vector.load %arg10[%c5_105, %c0_106, %c0_107] : memref<11x8x1xf32, #tpu.memory_space<vmem>>, vector<1x8x1xf32>
      %162 = vector.shape_cast %161 : vector<1x8x1xf32> to vector<8x1xf32>
      %c6_108 = arith.constant 6 : index
      %c0_109 = arith.constant 0 : index
      %c0_110 = arith.constant 0 : index
      %163 = vector.load %arg10[%c6_108, %c0_109, %c0_110] : memref<11x8x1xf32, #tpu.memory_space<vmem>>, vector<1x8x1xf32>
      %164 = vector.shape_cast %163 : vector<1x8x1xf32> to vector<8x1xf32>
      %c7_111 = arith.constant 7 : index
      %c0_112 = arith.constant 0 : index
      %c0_113 = arith.constant 0 : index
      %165 = vector.load %arg10[%c7_111, %c0_112, %c0_113] : memref<11x8x1xf32, #tpu.memory_space<vmem>>, vector<1x8x1xf32>
      %166 = vector.shape_cast %165 : vector<1x8x1xf32> to vector<8x1xf32>
      %167 = arith.mulf %162, %106 : vector<8x1xf32>
      %cst_114 = arith.constant 6.400000e+02 : f32
      %168 = vector.broadcast %cst_114 : f32 to vector<8x1xf32>
      %169 = arith.divf %167, %168 : vector<8x1xf32>
      %170 = arith.subf %166, %169 : vector<8x1xf32>
      %171 = arith.mulf %162, %162 : vector<8x1xf32>
      %cst_115 = arith.constant 6.400000e+02 : f32
      %172 = vector.broadcast %cst_115 : f32 to vector<8x1xf32>
      %173 = arith.divf %171, %172 : vector<8x1xf32>
      %174 = arith.subf %164, %173 : vector<8x1xf32>
      %cst_116 = arith.constant 0.000000e+00 : f32
      %175 = vector.broadcast %cst_116 : f32 to vector<8x1xf32>
      %176 = arith.maximumf %174, %175 : vector<8x1xf32>
      %cst_117 = arith.constant 9.99999971E-10 : f32
      %177 = vector.broadcast %cst_117 : f32 to vector<8x1xf32>
      %178 = arith.addf %114, %177 : vector<8x1xf32>
      %179 = arith.divf %170, %178 : vector<8x1xf32>
      %180 = arith.mulf %179, %179 : vector<8x1xf32>
      %181 = arith.mulf %180, %114 : vector<8x1xf32>
      %cst_118 = arith.constant 0.000000e+00 : f32
      %182 = vector.broadcast %cst_118 : f32 to vector<8x1xf32>
      %183 = arith.maximumf %181, %182 : vector<8x1xf32>
      %cst_119 = arith.constant 2.000000e+00 : f32
      %184 = vector.broadcast %cst_119 : f32 to vector<8x1xf32>
      %185 = arith.mulf %184, %179 : vector<8x1xf32>
      %186 = arith.mulf %185, %170 : vector<8x1xf32>
      %187 = arith.subf %176, %186 : vector<8x1xf32>
      %188 = arith.addf %187, %183 : vector<8x1xf32>
      %cst_120 = arith.constant 0.000000e+00 : f32
      %189 = vector.broadcast %cst_120 : f32 to vector<8x1xf32>
      %190 = arith.maximumf %188, %189 : vector<8x1xf32>
      %191 = math.sqrt %183 : vector<8x1xf32>
      %192 = math.sqrt %190 : vector<8x1xf32>
      %cst_121 = arith.constant 9.99999971E-10 : f32
      %193 = vector.broadcast %cst_121 : f32 to vector<8x1xf32>
      %194 = arith.addf %192, %193 : vector<8x1xf32>
      %195 = arith.divf %191, %194 : vector<8x1xf32>
      %cst_122 = arith.constant 9.99999971E-10 : f32
      %196 = vector.broadcast %cst_122 : f32 to vector<8x1xf32>
      %197 = arith.addf %195, %196 : vector<8x1xf32>
      %198 = math.log %197 : vector<8x1xf32>
      %cst_123 = arith.constant 0.434294492 : f32
      %199 = vector.broadcast %cst_123 : f32 to vector<8x1xf32>
      %200 = arith.mulf %198, %199 : vector<8x1xf32>
      %cst_124 = arith.constant 2.000000e+01 : f32
      %201 = vector.broadcast %cst_124 : f32 to vector<8x1xf32>
      %202 = arith.mulf %201, %200 : vector<8x1xf32>
      %cst_125 = arith.constant 1.000000e-01 : f32
      %203 = vector.broadcast %cst_125 : f32 to vector<8x1xf32>
      %204 = arith.mulf %203, %202 : vector<8x1xf32>
      %205 = arith.addf %160, %204 : vector<8x1xf32>
      %c8_126 = arith.constant 8 : index
      %c0_127 = arith.constant 0 : index
      %c0_128 = arith.constant 0 : index
      %206 = vector.load %arg10[%c8_126, %c0_127, %c0_128] : memref<11x8x1xf32, #tpu.memory_space<vmem>>, vector<1x8x1xf32>
      %207 = vector.shape_cast %206 : vector<1x8x1xf32> to vector<8x1xf32>
      %c9_129 = arith.constant 9 : index
      %c0_130 = arith.constant 0 : index
      %c0_131 = arith.constant 0 : index
      %208 = vector.load %arg10[%c9_129, %c0_130, %c0_131] : memref<11x8x1xf32, #tpu.memory_space<vmem>>, vector<1x8x1xf32>
      %209 = vector.shape_cast %208 : vector<1x8x1xf32> to vector<8x1xf32>
      %c10_132 = arith.constant 10 : index
      %c0_133 = arith.constant 0 : index
      %c0_134 = arith.constant 0 : index
      %210 = vector.load %arg10[%c10_132, %c0_133, %c0_134] : memref<11x8x1xf32, #tpu.memory_space<vmem>>, vector<1x8x1xf32>
      %211 = vector.shape_cast %210 : vector<1x8x1xf32> to vector<8x1xf32>
      %212 = arith.mulf %207, %106 : vector<8x1xf32>
      %cst_135 = arith.constant 6.400000e+02 : f32
      %213 = vector.broadcast %cst_135 : f32 to vector<8x1xf32>
      %214 = arith.divf %212, %213 : vector<8x1xf32>
      %215 = arith.subf %211, %214 : vector<8x1xf32>
      %216 = arith.mulf %207, %207 : vector<8x1xf32>
      %cst_136 = arith.constant 6.400000e+02 : f32
      %217 = vector.broadcast %cst_136 : f32 to vector<8x1xf32>
      %218 = arith.divf %216, %217 : vector<8x1xf32>
      %219 = arith.subf %209, %218 : vector<8x1xf32>
      %cst_137 = arith.constant 0.000000e+00 : f32
      %220 = vector.broadcast %cst_137 : f32 to vector<8x1xf32>
      %221 = arith.maximumf %219, %220 : vector<8x1xf32>
      %cst_138 = arith.constant 9.99999971E-10 : f32
      %222 = vector.broadcast %cst_138 : f32 to vector<8x1xf32>
      %223 = arith.addf %114, %222 : vector<8x1xf32>
      %224 = arith.divf %215, %223 : vector<8x1xf32>
      %225 = arith.mulf %224, %224 : vector<8x1xf32>
      %226 = arith.mulf %225, %114 : vector<8x1xf32>
      %cst_139 = arith.constant 0.000000e+00 : f32
      %227 = vector.broadcast %cst_139 : f32 to vector<8x1xf32>
      %228 = arith.maximumf %226, %227 : vector<8x1xf32>
      %cst_140 = arith.constant 2.000000e+00 : f32
      %229 = vector.broadcast %cst_140 : f32 to vector<8x1xf32>
      %230 = arith.mulf %229, %224 : vector<8x1xf32>
      %231 = arith.mulf %230, %215 : vector<8x1xf32>
      %232 = arith.subf %221, %231 : vector<8x1xf32>
      %233 = arith.addf %232, %228 : vector<8x1xf32>
      %cst_141 = arith.constant 0.000000e+00 : f32
      %234 = vector.broadcast %cst_141 : f32 to vector<8x1xf32>
      %235 = arith.maximumf %233, %234 : vector<8x1xf32>
      %236 = math.sqrt %228 : vector<8x1xf32>
      %237 = math.sqrt %235 : vector<8x1xf32>
      %cst_142 = arith.constant 9.99999971E-10 : f32
      %238 = vector.broadcast %cst_142 : f32 to vector<8x1xf32>
      %239 = arith.addf %237, %238 : vector<8x1xf32>
      %240 = arith.divf %236, %239 : vector<8x1xf32>
      %cst_143 = arith.constant 9.99999971E-10 : f32
      %241 = vector.broadcast %cst_143 : f32 to vector<8x1xf32>
      %242 = arith.addf %240, %241 : vector<8x1xf32>
      %243 = math.log %242 : vector<8x1xf32>
      %cst_144 = arith.constant 0.434294492 : f32
      %244 = vector.broadcast %cst_144 : f32 to vector<8x1xf32>
      %245 = arith.mulf %243, %244 : vector<8x1xf32>
      %cst_145 = arith.constant 2.000000e+01 : f32
      %246 = vector.broadcast %cst_145 : f32 to vector<8x1xf32>
      %247 = arith.mulf %246, %245 : vector<8x1xf32>
      %cst_146 = arith.constant 1.000000e-01 : f32
      %248 = vector.broadcast %cst_146 : f32 to vector<8x1xf32>
      %249 = arith.mulf %248, %247 : vector<8x1xf32>
      %250 = arith.addf %205, %249 : vector<8x1xf32>
      %c0_147 = arith.constant 0 : index
      %c0_148 = arith.constant 0 : index
      %251 = vector.load %arg8[%c0_147, %c0_148] : memref<8x1xf32, #tpu.memory_space<vmem>>, vector<8x1xf32>
      tpu.vector_store %arg8[%c0_147, %c0_148], %250 {strides = array<i32>} : memref<8x1xf32, #tpu.memory_space<vmem>>, vector<8x1xf32>,
      %c0_149 = arith.constant 0 : index
      %c0_150 = arith.constant 0 : index
      %252 = vector.load %arg6[%c0_149, %c0_150] : memref<8x16xf32, #tpu.memory_space<vmem>>, vector<8x16xf32>
      %c0_151 = arith.constant 0 : index
      %c0_152 = arith.constant 0 : index
      %253 = vector.load %arg7[%c0_151, %c0_152] : memref<8x1xi32, #tpu.memory_space<vmem>>, vector<8x1xi32>
      %cst_153 = arith.constant dense<0xFF800000> : vector<8xf32>
      %254 = vector.multi_reduction <maximumf>, %252, %cst_153 [1] : vector<8x16xf32> to vector<8xf32>
      %255 = vector.shape_cast %254 : vector<8xf32> to vector<8x1xf32>
      %256 = vector.broadcast %255 : vector<8x1xf32> to vector<8x16xf32>
      %257 = arith.subf %252, %256 : vector<8x16xf32>
      %258 = math.exp %257 : vector<8x16xf32>
      %cst_154 = arith.constant dense<0.000000e+00> : vector<8xf32>
      %259 = vector.multi_reduction <add>, %258, %cst_154 [1] : vector<8x16xf32> to vector<8xf32>
      %260 = vector.shape_cast %259 : vector<8xf32> to vector<8x1xf32>
      %261 = math.log %260 : vector<8x1xf32>
      %262 = arith.addf %261, %255 : vector<8x1xf32>
      %263 = tpu.iota {dimensions = array<i32: 1>} : vector<8x16xi32>
      %264 = vector.broadcast %253 : vector<8x1xi32> to vector<8x16xi32>
      %265 = arith.cmpi eq, %263, %264 : vector<8x16xi32>
      %cst_155 = arith.constant 0.000000e+00 : f32
      %266 = vector.broadcast %cst_155 : f32 to vector<8x16xf32>
      %267 = arith.select %265, %252, %266 : vector<8x16xi1>, vector<8x16xf32>
      %cst_156 = arith.constant dense<0.000000e+00> : vector<8xf32>
      %268 = vector.multi_reduction <add>, %267, %cst_156 [1] : vector<8x16xf32> to vector<8xf32>
      %269 = vector.shape_cast %268 : vector<8xf32> to vector<8x1xf32>
      %270 = arith.subf %262, %269 : vector<8x1xf32>
      %c0_157 = arith.constant 0 : index
      %c0_158 = arith.constant 0 : index
      %271 = vector.load %arg9[%c0_157, %c0_158] : memref<8x1xf32, #tpu.memory_space<vmem>>, vector<8x1xf32>
      tpu.vector_store %arg9[%c0_157, %c0_158], %270 {strides = array<i32>} : memref<8x1xf32, #tpu.memory_space<vmem>>, vector<8x1xf32>,
    } else {
    }
    return
  }
  func.func @transform_0(%arg0: i32, %arg1: i32) -> (i32, i32) {
    %c0_i32 = arith.constant 0 : i32
    return %arg0, %arg1 : i32, i32
  }
  func.func @transform_1(%arg0: i32, %arg1: i32) -> (i32, i32) {
    %c0_i32 = arith.constant 0 : i32
    return %arg0, %arg1 : i32, i32
  }
  func.func @transform_2(%arg0: i32, %arg1: i32) -> (i32, i32) {
    %c0_i32 = arith.constant 0 : i32
    return %arg0, %arg1 : i32, i32
  }
  func.func @transform_3(%arg0: i32, %arg1: i32) -> (i32, i32) {
    %c0_i32 = arith.constant 0 : i32
    return %arg0, %arg1 : i32, i32
  }
  func.func @transform_4(%arg0: i32, %arg1: i32) -> (i32, i32) {
    %c0_i32 = arith.constant 0 : i32
    %c0_i32_0 = arith.constant 0 : i32
    return %arg0, %c0_i32 : i32, i32
  }
  func.func @transform_5(%arg0: i32, %arg1: i32) -> (i32, i32) {
    %c0_i32 = arith.constant 0 : i32
    %c0_i32_0 = arith.constant 0 : i32
    return %arg0, %c0_i32 : i32, i32
  }
  func.func @transform_6(%arg0: i32, %arg1: i32) -> (i32, i32) {
    %c0_i32 = arith.constant 0 : i32
    %c0_i32_0 = arith.constant 0 : i32
    return %arg0, %c0_i32 : i32, i32
  }
  func.func @transform_7(%arg0: i32, %arg1: i32) -> (i32, i32) {
    %c0_i32 = arith.constant 0 : i32
    %c0_i32_0 = arith.constant 0 : i32
    return %arg0, %c0_i32 : i32, i32
  }
}

</mosaic_0001>

<bundles_post_ra>
// kernel: tpu_custom_call.1
= control target key start
LH: loop header
LB: loop body
LE: loop exit
PB: predicated region body
PF: predicated region fallthrough
CT: control target
= control target key end

     0   :  { %s1608_s0 = inlined_call_operand.hbm [shape: f32[16,640], index: 0, kind: input, shape index: {}]   ;;  %s1609_s1 = inlined_call_operand.hbm [shape: f32[16,640], index: 1, kind: input, shape index: {}]   ;;  %s1610_s2 = inlined_call_operand.hbm [shape: f32[16,640], index: 2, kind: input, shape index: {}]   ;;  %s1611_s3 = inlined_call_operand.hbm [shape: f32[16,640], index: 3, kind: input, shape index: {}]   ;;  %s1612_s4 = inlined_call_operand.vmem [shape: f32[16,16], index: 4, kind: input, shape index: {}]   ;;  %s1613_s5 = inlined_call_operand.vmem [shape: s32[16,1], index: 5, kind: input, shape index: {}]   ;;  %s1614_s6 = inlined_call_operand.vmem [shape: f32[16,1], index: 6, kind: output, shape index: {0}]   ;;  %s1615_s7 = inlined_call_operand.vmem [shape: f32[16,1], index: 7, kind: output, shape index: {1}]  }
   0x1   :  { %1621 = sst [smem:[#allocation17_spill]] %s1608_s0 }
   0x2   :  { %1622 = sst [smem:[#allocation18_spill]] %s1609_s1 }
   0x3   :  { %13 = vsyncpa [#allocation4], 0 }
   0x4   :  { %15 = vsyncpa [#allocation4 + $0x1], 0 }
   0x5   :  { %16 = vsyncpa [#allocation6], 0 }
   0x6   :  { %18 = vsyncpa [#allocation6 + $0x1], 0 }
   0x7   :  { %19 = vsyncpa [#allocation9], 0 }
   0x8   :  { %21 = vsyncpa [#allocation9 + $0x1], 0  ;;  %s1325_s24 = smov 0   ;;  %s1327_s25 = smov 0  }
   0x9   :  { %s1329_s26 = smov 0   ;;  %s1331_s27 = smov 0  }
   0xa   :  { %s1333_s28 = smov 0   ;;  %s1335_s29 = smov 0  }
   0xb   :  { %s1337_s30 = smov 0   ;;  %s1339_s8 = smov 0  }
   0xc LB: > { %1623 = sst [smem:[#allocation13_spill]] %s1269_s29  ;;  %s1616_s9 = sadd.s32 4294967295, %s1277_s8   ;;  %s1277_s8 = sphi %s1339_s8, %s27_s8   ;;  %s1273_s30 = sphi %s1337_s30, %s1636_s30   ;;  %s1269_s29 = sphi %s1335_s29, %s1635_s29   ;;  %s1265_s28 = sphi %s1333_s28, %s1634_s28   ;;  %s1261_s27 = sphi %s1331_s27, %s1633_s27   ;;  %s1257_s26 = sphi %s1329_s26, %s1639_s26   ;;  %s1253_s25 = sphi %s1327_s25, %s1638_s25   ;;  %s1249_s24 = sphi %s1325_s24, %s1637_s24  }
   0xd   : > { %1624 = sst [smem:[#allocation14_spill]] %s1273_s30  ;;  %s36_s10 = sadd.s32 1, %s1269_s29 }
   0xe   : > { %p37_p0 = scmp.ge.s32.totalorder %s36_s10, 5  ;;  %s39_s11 = sadd.s32 1, %s1273_s30 }
   0xf   : > { %s48_s12 = sadd.s32 1, %s1257_s26  ;;  %p55_p1 = scmp.ne.s32.totalorder %s1257_s26, %s1253_s25 }
  0x10   : > { %s1641_s10 = smov (%p37_p0, %s36_s10), 0  ;;  %s1643_s11 = smov (!%p37_p0, %s39_s11), %s1273_s30 }
  0x11   : > { %1625 = sst [smem:[#allocation15_spill]] %s1641_s10  ;;  %s44_s13 = ssub.s32 %s1269_s29, %s1641_s10 }
  0x12   : > { %p56_p2 = scmp.eq.s32.totalorder %s1277_s8, 0  ;;  %p41_p3 = scmp.ge.s32.totalorder %s1643_s11, 2 }
  0x13   : > { %p61_p4 = scmp.ne.s32.totalorder %s1253_s25, %s1249_s24  ;;  %p62_p6 = scmp.eq.s32.totalorder %s1616_s9, 0 }
  0x14   : > { %p57_p5 = por %p56_p2, %p55_p1  ;;  %s1645_s11 = smov (%p41_p3, %s1643_s11), 0 }
  0x15   : > { %1626 = sst [smem:[#allocation16_spill]] %s1645_s11  ;;  %p1380_p7 = por %p62_p6, %p61_p4 }
  0x16   : > { %s43_s15 = ssub.s32 %s1273_s30, %s1645_s11  ;;  %p993_p8 = scmp.lt.s32.totalorder %s1277_s8, 10 }
  0x17   : > { %s45_s16 = sor.u32 %s44_s13, %s43_s15  ;;  %s1388_s17 = sand.u32 1, %s1257_s26  }
  0x18   : > { %p46_p9 = scmp.eq.s32.totalorder %s45_s16, 0  ;;  %s1391_s18 = sshll.u32 %s1388_s17, 3 }
  0x19   : > { %s968_s19 = smul.u32 5, %s1273_s30  ;;  %p1394_p10 = pnand %p993_p8, %p57_p5 }
  0x1a   : > { %s1399_s21 = scalar_select %p46_p9, %s1257_s26, %s48_s12  }
  0x1b   : > { %s282_s22 = sadd.s32 %s1269_s29, %s968_s19  ;;  %s293_s24 = sand.u32 1, %s1277_s8  }
  0x1c   : > { %s1402_s23 = sshll.u32 %s282_s22, 7  ;;  %s1629_s1 = sld [smem:[#allocation18_spill]] }
  0x1d   : > { %s297_s9 = scalar_lea.vmem [#allocation5], %s1391_s18  ;;  %p955_p11 = scmp.ge.s32.totalorder %s1277_s8, 1 }
  0x1e   : > { %s306_s11 = sshll.u32 %s297_s9, 4  ;;  %s1411_s10 = scalar_lea.sflag [#allocation6], %s293_s24  ;;  %s307_s11 = int_to_ptr.vmem [resolvable:$true] %s306_s11 }
  0x1f   : > { %p1093_p12 = pneg %p1394_p10  ;;  %s1104_s30 = scalar_lea.vmem %s307_s11, 128 }
  0x20   : > { %p1105_p13 = scmp.ne.s32.totalorder %s307_s11, %s1104_s30  ;;  %s1279_s12 = smov [#allocation5]  }
  0x21   : > { %s1109_s19 = sshll.u32 %s1279_s12, 4  ;;  %s1110_s19 = int_to_ptr.vmem [resolvable:$false] %s1109_s19 }
  0x22   : > { %s304_s16 = scalar_lea.hbm %s1629_s1, %s1402_s23  ;;  %p1107_p0 = pnand %p1105_p13, %p1093_p12 }
  0x23   : > { %s1111_s22 = scalar_lea.vmem %s1110_s19, 256  ;;  %p1112_p2 = scmp.lt.s32.totalorder %s307_s11, %s1110_s19 }
  0x24   : > { %p1108_p1 = pneg %p1107_p0  ;;  %p1113_p3 = scmp.lt.s32.totalorder %s1111_s22, %s1104_s30 }
  0x26   : > { %p1114_p4 = por %p1113_p3, %p1112_p2 }
  0x28   : > { %p1115_p5 = pnand %p1114_p4, %p1108_p1 }
  0x2a   : > { %1118 = shalt.err (!%p1115_p5)
}
  0x2b   : > { %986 = dma.hbm_to_vmem [thread:$0]  (!%p1394_p10), %s304_s16, 128, %s307_s11, %s1411_s10  }
  0x2c   : > { %p365_p6 = scmp.lt.s32.totalorder %s1277_s8, 11  ;;  %s1631_s0 = sld [smem:[#allocation17_spill]] }
  0x2d   : > { %s277_s15 = scalar_lea.vmem [#allocation3], %s1391_s18  ;;  %s274_s19 = scalar_lea.sflag [#allocation4], %s1388_s17 }
  0x2e   : > { %p1424_p8 = pnand %p955_p11, %p365_p6  ;;  %s286_s12 = sshll.u32 %s277_s15, 4  ;;  %s287_s12 = int_to_ptr.vmem [resolvable:$true] %s286_s12 }
  0x2f   : > { %s1132_s22 = scalar_lea.vmem %s287_s12, 128  ;;  %s1280_s11 = smov [#allocation3]  }
  0x30   : > { %p1133_p9 = scmp.ne.s32.totalorder %s287_s12, %s1132_s22  ;;  %s1137_s16 = sshll.u32 %s1280_s11, 4  ;;  %s1138_s16 = int_to_ptr.vmem [resolvable:$false] %s1137_s16 }
  0x31   : > { %s1139_s1 = scalar_lea.vmem %s1138_s16, 256  ;;  %p1140_p11 = scmp.lt.s32.totalorder %s287_s12, %s1138_s16 }
  0x32   : > { %s284_s13 = scalar_lea.hbm %s1631_s0, %s1402_s23  ;;  %p1135_p13 = pnand %p1133_p9, %p1093_p12 }
  0x33   : > { %p1141_p1 = scmp.lt.s32.totalorder %s1139_s1, %s1132_s22 }
  0x34   : > { %p1136_p0 = pneg %p1135_p13 }
  0x35   : > { %p1142_p2 = por %p1141_p1, %p1140_p11 }
  0x37   : > { %p1143_p3 = pnand %p1142_p2, %p1136_p0 }
  0x39   : > { %1146 = shalt.err (!%p1143_p3)
}
  0x3a   : > { %983 = dma.hbm_to_vmem [thread:$0]  (!%p1394_p10), %s284_s13, 128, %s287_s12, %s274_s19  }
  0x3b   : > { %s324_s15 = scalar_lea.hbm %s1610_s2, %s1402_s23  ;;  %s317_s0 = scalar_lea.vmem [#allocation7], %s1391_s18 }
  0x3c   : > { %s326_s29 = sshll.u32 %s317_s0, 4  ;;  %s1281_s1 = smov [#allocation7]   ;;  %s327_s29 = int_to_ptr.vmem [resolvable:$true] %s326_s29 }
  0x3d   : > { %s1160_s11 = scalar_lea.vmem %s327_s29, 128  ;;  %s1165_s22 = sshll.u32 %s1281_s1, 4  ;;  %s1166_s22 = int_to_ptr.vmem [resolvable:$false] %s1165_s22 }
  0x3e   : > { %p1161_p4 = scmp.ne.s32.totalorder %s327_s29, %s1160_s11  ;;  %s1167_s16 = scalar_lea.vmem %s1166_s22, 256 }
  0x3f   : > { %p1168_p9 = scmp.lt.s32.totalorder %s327_s29, %s1166_s22  ;;  %p1169_p13 = scmp.lt.s32.totalorder %s1167_s16, %s1160_s11 }
  0x40   : > { %p1163_p5 = pnand %p1161_p4, %p1093_p12 }
  0x41   : > { %p1170_p0 = por %p1169_p13, %p1168_p9 }
  0x42   : > { %p1164_p6 = pneg %p1163_p5 }
  0x44   : > { %p1171_p11 = pnand %p1170_p0, %p1164_p6 }
  0x46   : > { %1174 = shalt.err (!%p1171_p11)
}
  0x47   : > { %989 = dma.hbm_to_vmem [thread:$0]  (!%p1394_p10), %s324_s15, 128, %s327_s29, %s1411_s10  }
  0x48   : > { %s344_s12 = scalar_lea.hbm %s1611_s3, %s1402_s23  ;;  %s337_s19 = scalar_lea.vmem [#allocation8], %s1391_s18 }
  0x49   : > { %s346_s30 = sshll.u32 %s337_s19, 4  ;;  %s334_s24 = scalar_lea.sflag [#allocation9], %s1388_s17  ;;  %s347_s30 = int_to_ptr.vmem [resolvable:$true] %s346_s30 }
  0x4a   : > { %s1188_s11 = scalar_lea.vmem %s347_s30, 128  ;;  %s1282_s1 = smov [#allocation8]  }
  0x4b   : > { %p1189_p1 = scmp.ne.s32.totalorder %s347_s30, %s1188_s11  ;;  %s1193_s22 = sshll.u32 %s1282_s1, 4  ;;  %s1194_s22 = int_to_ptr.vmem [resolvable:$false] %s1193_s22 }
  0x4c   : > { %s1195_s16 = scalar_lea.vmem %s1194_s22, 256  ;;  %p1196_p4 = scmp.lt.s32.totalorder %s347_s30, %s1194_s22 }
  0x4d   : > { %p1191_p2 = pnand %p1189_p1, %p1093_p12  ;;  %p1197_p5 = scmp.lt.s32.totalorder %s1195_s16, %s1188_s11 }
  0x4f   : > { %p1192_p3 = pneg %p1191_p2  ;;  %p1198_p6 = por %p1197_p5, %p1196_p4 }
  0x51   : > { %p1199_p9 = pnand %p1198_p6, %p1192_p3 }
  0x53   : > { %1202 = shalt.err (!%p1199_p9)
}
  0x54   : > { %992 = dma.hbm_to_vmem [thread:$0]  (!%p1394_p10), %s344_s12, 128, %s347_s30, %s334_s24  }
  0x55   : > { %369 = sbr.rel (%p1424_p8) target bundleno = 592 (0x250), region = 44  ;;  %s371_s29 = sand.u32 (!%p1424_p8), 1, %s1253_s25  }
  0x56   : > { %s1464_s10 = sshll.u32 (!%p1424_p8), %s371_s29, 3  ;;  %s372_s17 = scalar_lea.sflag (!%p1424_p8), [#allocation4], %s371_s29 }
  0x57   : > { %s375_s18 = scalar_lea.vmem (!%p1424_p8), [#allocation3], %s1464_s10 }
  0x5a   : > { %1236 = dma.done.wait (%p1380_p7), %s372_s17, 128  }
  0x5b   : > { %1238 = vsyncadd (%p1380_p7), %s372_s17, 4294967168  ;;  %s1632_s23 = sadd.s32 4294967295, %s1277_s8   ;;  %s384_s15 = scalar_lea.vmem [#allocation5], %s1464_s10 }
  0x5c   : > { %s380_s20 = sand.u32 1, %s1632_s23  }
  0x5d   : > { %s381_s9 = scalar_lea.sflag [#allocation6], %s380_s20 }
  0x5e   : > { %1240 = dma.done.wait (%p1380_p7), %s381_s9, 256  }
  0x5f   : > { %1242 = vsyncadd (%p1380_p7), %s381_s9, 4294967040  ;;  %s393_s0 = scalar_lea.vmem [#allocation7], %s1464_s10  ;;  %s399_s13 = scalar_lea.sflag [#allocation9], %s371_s29 }
  0x60   : > { %s402_s12 = scalar_lea.vmem [#allocation8], %s1464_s10 }
  0x61   : > { %1244 = dma.done.wait (%p1380_p7), %s399_s13, 128  }
  0x62   : > { %1246 = vsyncadd (%p1380_p7), %s399_s13, 4294967168  ;;  %p459_p10 = scmp.lt.s32.totalorder %s1265_s28, 1  ;;  %p964_p7 = scmp.ne.s32.totalorder %s1261_s27, 0 }
  0x64   : > { %s1647_s28 = smov (!%p459_p10, %s1265_s28), 1  ;;  %478 = sbr.rel (%p964_p7) target bundleno = 112 (0x70), region = 64 }
  0x65   : > { %s1486_s19 = sshll.u32 %s1647_s28, 3 }
  0x66   : > { %s462_s11 = scalar_lea.vmem %s1612_s4, %s1486_s19  ;;  %s466_s16 = scalar_lea.vmem %s1613_s5, %s1486_s19 }
  0x67   : > { %s470_s17 = scalar_lea.vmem %s1614_s6, %s1486_s19  ;;  %s474_s28 = scalar_lea.vmem %s1615_s7, %s1486_s19 }
  0x69   : > { %vm479_vm0 = vcmask 7168   ;;  %v1283_v0 = vmov 0.0  }
  0x6a   : > { %480 = vst.msk [vmem:[#allocation2] sm:$0xff] %vm479_vm0, %v1283_v0  ;;  %481 = vst.msk [vmem:[#allocation2 + $0x8] sm:$0xff] %vm479_vm0, %v1283_v0 }
  0x6b   : > { %482 = vst.msk [vmem:[#allocation2 + $0x10] sm:$0xff] %vm479_vm0, %v1283_v0  ;;  %483 = vst.msk [vmem:[#allocation2 + $0x18] sm:$0xff] %vm479_vm0, %v1283_v0 }
  0x6c   : > { %484 = vst.msk [vmem:[#allocation2 + $0x20] sm:$0xff] %vm479_vm0, %v1283_v0  ;;  %485 = vst.msk [vmem:[#allocation2 + $0x28] sm:$0xff] %vm479_vm0, %v1283_v0 }
  0x6d   : > { %486 = vst.msk [vmem:[#allocation2 + $0x30] sm:$0xff] %vm479_vm0, %v1283_v0  ;;  %487 = vst.msk [vmem:[#allocation2 + $0x38] sm:$0xff] %vm479_vm0, %v1283_v0 }
  0x6e   : > { %488 = vst.msk [vmem:[#allocation2 + $0x40] sm:$0xff] %vm479_vm0, %v1283_v0  ;;  %489 = vst.msk [vmem:[#allocation2 + $0x48] sm:$0xff] %vm479_vm0, %v1283_v0 }
  0x6f   : > { %490 = vst.msk [vmem:[#allocation2 + $0x50] sm:$0xff] %vm479_vm0, %v1283_v0 }
  0x70 PF: > { %v491_v1 = vld [vmem:[%s402_s12] sm:$0xff]  ;;  %v505_v2 = vld [vmem:[%s375_s18] sm:$0xff]  ;;  %vm496_vm1 = vcmask 7168   ;;  %p965_p12 = scmp.ne.s32.totalorder %s1261_s27, 4 }
  0x71   : > { %493 = vadd.xlane.f32.xlu0 %v491_v1  ;;  %508 = vadd.xlane.f32.xlu1 %v505_v2  ;;  %v500_v3 = vmul.f32 %v491_v1, %v491_v1  ;;  %v514_v4 = vmul.f32 %v505_v2, %v505_v2  ;;  %v521_v5 = vmul.f32 %v505_v2, %v491_v1  ;;  %v526_v6 = vld [vmem:[%s384_s15] sm:$0xff]  ;;  %v547_v9 = vld [vmem:[%s393_s0] sm:$0xff] }
  0x72   : > { %v535_v7 = vmul.f32 %v526_v6, %v526_v6  ;;  %v542_v8 = vmul.f32 %v526_v6, %v491_v1  ;;  %v556_v10 = vmul.f32 %v547_v9, %v547_v9  ;;  %v563_v11 = vmul.f32 %v547_v9, %v491_v1  ;;  %v492_v12 = vld [vmem:[#allocation2] sm:$0xff]  ;;  %v507_v13 = vld [vmem:[#allocation2 + $0x10] sm:$0xff]  ;;  %v499_v18 = vld [vmem:[#allocation2 + $0x8] sm:$0xff] }
  0x73   : > { %v513_v19 = vld [vmem:[#allocation2 + $0x18] sm:$0xff]  ;;  %v520_v24 = vld [vmem:[#allocation2 + $0x20] sm:$0xff]  ;;  %v528_v25 = vld [vmem:[#allocation2 + $0x28] sm:$0xff] }
  0x74   : > { %v534_v30 = vld [vmem:[#allocation2 + $0x30] sm:$0xff]  ;;  %v541_v31 = vld [vmem:[#allocation2 + $0x38] sm:$0xff] }
  0x75   : > { %501 = vadd.xlane.f32.xlu0 %v500_v3  ;;  %515 = vadd.xlane.f32.xlu1 %v514_v4  ;;  %v549_v36 = vld [vmem:[#allocation2 + $0x40] sm:$0xff]  ;;  %v555_v37 = vld [vmem:[#allocation2 + $0x48] sm:$0xff] }
  0x76   : > { %v562_v42 = vld [vmem:[#allocation2 + $0x50] sm:$0xff] }
  0x79   : > { %522 = vadd.xlane.f32.xlu0 %v521_v5  ;;  %529 = vadd.xlane.f32.xlu1 %v526_v6 }
  0x7d   : > { %536 = vadd.xlane.f32.xlu0 %v535_v7  ;;  %543 = vadd.xlane.f32.xlu1 %v542_v8 }
  0x81   : > { %550 = vadd.xlane.f32.xlu0 %v547_v9  ;;  %557 = vadd.xlane.f32.xlu1 %v556_v10 }
  0x85   : > { %564 = vadd.xlane.f32.xlu0 %v563_v11 }
  0xfa   : > { %v494_v14 = vpop.xlane.xlu0 %493  ;;  %v509_v15 = vpop.xlane.xlu1 %508 }
  0xfb   : > { %v495_v16 = vadd.f32 %v494_v14, %v492_v12  ;;  %v510_v17 = vadd.f32 %v509_v15, %v507_v13 }
  0xfd   : > { %497 = vst.msk [vmem:[#allocation2] sm:$0xff] %vm496_vm1, %v495_v16  ;;  %511 = vst.msk [vmem:[#allocation2 + $0x10] sm:$0xff] %vm496_vm1, %v510_v17 }
  0xfe   : > { %v502_v20 = vpop.xlane.xlu0 %501  ;;  %v516_v21 = vpop.xlane.xlu1 %515 }
  0xff   : > { %v503_v22 = vadd.f32 %v502_v20, %v499_v18  ;;  %v517_v23 = vadd.f32 %v516_v21, %v513_v19 }
 0x101   : > { %504 = vst.msk [vmem:[#allocation2 + $0x8] sm:$0xff] %vm496_vm1, %v503_v22  ;;  %518 = vst.msk [vmem:[#allocation2 + $0x18] sm:$0xff] %vm496_vm1, %v517_v23 }
 0x102   : > { %v523_v26 = vpop.xlane.xlu0 %522  ;;  %v530_v27 = vpop.xlane.xlu1 %529 }
 0x103   : > { %v524_v28 = vadd.f32 %v523_v26, %v520_v24  ;;  %v531_v29 = vadd.f32 %v530_v27, %v528_v25 }
 0x105   : > { %525 = vst.msk [vmem:[#allocation2 + $0x20] sm:$0xff] %vm496_vm1, %v524_v28  ;;  %532 = vst.msk [vmem:[#allocation2 + $0x28] sm:$0xff] %vm496_vm1, %v531_v29 }
 0x106   : > { %v537_v32 = vpop.xlane.xlu0 %536  ;;  %v544_v33 = vpop.xlane.xlu1 %543 }
 0x107   : > { %v538_v34 = vadd.f32 %v537_v32, %v534_v30  ;;  %v545_v35 = vadd.f32 %v544_v33, %v541_v31 }
 0x109   : > { %539 = vst.msk [vmem:[#allocation2 + $0x30] sm:$0xff] %vm496_vm1, %v538_v34  ;;  %546 = vst.msk [vmem:[#allocation2 + $0x38] sm:$0xff] %vm496_vm1, %v545_v35 }
 0x10a   : > { %v551_v38 = vpop.xlane.xlu0 %550  ;;  %v558_v39 = vpop.xlane.xlu1 %557 }
 0x10b   : > { %v552_v40 = vadd.f32 %v551_v38, %v549_v36  ;;  %v559_v41 = vadd.f32 %v558_v39, %v555_v37 }
 0x10d   : > { %553 = vst.msk [vmem:[#allocation2 + $0x40] sm:$0xff] %vm496_vm1, %v552_v40  ;;  %560 = vst.msk [vmem:[#allocation2 + $0x48] sm:$0xff] %vm496_vm1, %v559_v41  ;;  %571 = sbr.rel (%p965_p12) target bundleno = 592 (0x250), region = 68 }
 0x10e   : > { %v565_v43 = vpop.xlane.xlu0 %564 }
 0x10f   : > { %v566_v44 = vadd.f32 %v565_v43, %v562_v42 }
 0x111   : > { %567 = vst.msk [vmem:[#allocation2 + $0x50] sm:$0xff] %vm496_vm1, %v566_v44 }
 0x112   : > { %v1528_v45 = vld [vmem:[%s462_s11] sm:$0xff]  ;;  %vm713_vm2 = vcmask 130048   ;;  %v1284_v47 = vmov 0   ;;  %v573_v52 = vld [vmem:[#allocation2 + $0x8] sm:$0xff]  ;;  %v579_v56 = vld [vmem:[#allocation2 + $0x10] sm:$0xff] }
 0x113   : > { %v714_v46 = vsel %vm713_vm2, %v1528_v45, -inf  ;;  %1060 = vset.pattern.permute.xlu0 %v1284_v47  ;;  %v712_v48 = vld [vmem:[%s466_s16] sm:$0xff]  ;;  %v624_v57 = vld [vmem:[#allocation2 + $0x28] sm:$0xff]  ;;  %v626_v1 = vld [vmem:[#allocation2 + $0x38] sm:$0xff]  ;;  %v585_v3 = vmul.f32 %v579_v56, %v579_v56 }
 0x114   : > { %715 = vmax.xlane.f32.xlu0 %v714_v46  ;;  %v572_v49 = vld [vmem:[#allocation2] sm:$0xff]  ;;  %v630_v5 = vmul.f32 %v624_v57, %v624_v57  ;;  %v580_v13 = vld [vmem:[#allocation2 + $0x18] sm:$0xff]  ;;  %v625_v14 = vld [vmem:[#allocation2 + $0x30] sm:$0xff] }
 0x115   : > { %v574_v50 = vmul.f32 %v572_v49, %v572_v49  ;;  %v582_v58 = vmul.f32 %v579_v56, %v572_v49  ;;  %v627_v59 = vmul.f32 %v624_v57, %v572_v49  ;;  %v667_v60 = vld [vmem:[#allocation2 + $0x40] sm:$0xff]  ;;  %v586_v9 = vmul.f32 0.0015625, %v585_v3  ;;  %v668_v23 = vld [vmem:[#allocation2 + $0x48] sm:$0xff] }
 0x116   : > { %v670_v63 = vmul.f32 %v667_v60, %v572_v49  ;;  %v581_v0 = vld [vmem:[#allocation2 + $0x20] sm:$0xff]  ;;  %v631_v11 = vmul.f32 0.0015625, %v630_v5  ;;  %v673_v16 = vmul.f32 %v667_v60, %v667_v60 }
 0x117   : > { %v576_v51 = vmul.f32 0.0015625, %v574_v50  ;;  %v583_v61 = vmul.f32 0.0015625, %v582_v58  ;;  %v628_v62 = vmul.f32 0.0015625, %v627_v59  ;;  %v587_v17 = vsub.f32 %v580_v13, %v586_v9 }
 0x118   : > { %v669_v7 = vld [vmem:[#allocation2 + $0x50] sm:$0xff]  ;;  %v671_v8 = vmul.f32 0.0015625, %v670_v63  ;;  %v632_v20 = vsub.f32 %v625_v14, %v631_v11  ;;  %v674_v24 = vmul.f32 0.0015625, %v673_v16 }
 0x119   : > { %v577_v53 = vsub.f32 %v573_v52, %v576_v51  ;;  %v584_v2 = vsub.f32 %v581_v0, %v583_v61  ;;  %v629_v4 = vsub.f32 %v626_v1, %v628_v62  ;;  %v588_v26 = vmax.f32 %v587_v17, 0.0 }
 0x11a   : > { %v672_v15 = vsub.f32 %v669_v7, %v671_v8  ;;  %v633_v29 = vmax.f32 %v632_v20, 0.0  ;;  %v675_v32 = vsub.f32 %v668_v23, %v674_v24 }
 0x11b   : > { %v578_v54 = vmax.f32 %v577_v53, 0.0 }
 0x11c   : > { %v676_v39 = vmax.f32 %v675_v32, 0.0 }
 0x11d   : > { %v589_v55 = vadd.f32 1e-09, %v578_v54 }
 0x11f   : > { %1061 = vrcp.f32 %v589_v55 }
 0x12a   : > { %729 = vperm.xlu0 %1060, %v712_v48  }
 0x12c   : > { %v1062_v6 = vpop.eup %1061 }
 0x12d   : > { %v591_v10 = vmul.f32 %v1062_v6, %v584_v2  ;;  %v634_v12 = vmul.f32 %v1062_v6, %v629_v4  ;;  %v677_v25 = vmul.f32 %v1062_v6, %v672_v15 }
 0x12f   : > { %v592_v18 = vmul.f32 %v591_v10, %v591_v10  ;;  %v595_v19 = vmul.f32 2.0, %v591_v10  ;;  %v635_v21 = vmul.f32 %v634_v12, %v634_v12  ;;  %v638_v22 = vmul.f32 2.0, %v634_v12 }
 0x130   : > { %v678_v33 = vmul.f32 %v677_v25, %v677_v25  ;;  %v681_v36 = vmul.f32 2.0, %v677_v25 }
 0x131   : > { %v593_v27 = vmul.f32 %v592_v18, %v578_v54  ;;  %v596_v28 = vmul.f32 %v595_v19, %v584_v2  ;;  %v636_v30 = vmul.f32 %v635_v21, %v578_v54  ;;  %v639_v31 = vmul.f32 %v638_v22, %v629_v4 }
 0x132   : > { %v679_v40 = vmul.f32 %v678_v33, %v578_v54  ;;  %v682_v42 = vmul.f32 %v681_v36, %v672_v15  ;;  %v726_v54 = vlaneseq }
 0x133   : > { %v1537_v34 = vmax.f32 %v593_v27, 0.0  ;;  %v597_v35 = vsub.f32 %v588_v26, %v596_v28  ;;  %v1539_v37 = vmax.f32 %v636_v30, 0.0  ;;  %v640_v38 = vsub.f32 %v633_v29, %v639_v31 }
 0x134   : > { %v1543_v44 = vmax.f32 %v679_v40, 0.0  ;;  %v683_v47 = vsub.f32 %v676_v39, %v682_v42  ;;  %v727_v8 = vand.u32 127, %v726_v54 }
 0x135   : > { %v598_v41 = vadd.f32 %v597_v35, %v1537_v34  ;;  %v641_v43 = vadd.f32 %v640_v38, %v1539_v37  ;;  %vm602_vm10 = vcmp.eq.f32.partialorder %v1537_v34, inf  ;;  %v605_v16 = vand.u32 2147483648, %v1537_v34 }
 0x136   : > { %v684_v49 = vadd.f32 %v683_v47, %v1543_v44  ;;  %vm645_vm11 = vcmp.eq.f32.partialorder %v1539_v37, inf  ;;  %vm604_vm12 = vcmp.eq.f32.partialorder %v1537_v34, 0.0  ;;  %vm647_vm13 = vcmp.eq.f32.partialorder %v1539_v37, 0.0 }
 0x137   : > { %v599_v46 = vmax.f32 %v598_v41, 0.0  ;;  %v642_v48 = vmax.f32 %v641_v43, 0.0  ;;  %vm688_vm14 = vcmp.eq.f32.partialorder %v1543_v44, inf  ;;  %vm690_vm15 = vcmp.eq.f32.partialorder %v1543_v44, 0.0 }
 0x138   : > { %v685_v50 = vmax.f32 %v684_v49, 0.0  ;;  %v691_v29 = vand.u32 2147483648, %v1543_v44 }
 0x139   : > { %1063 = vrsqrt.f32 %v599_v46  ;;  %vm609_vm3 = vcmp.eq.f32.partialorder %v599_v46, inf  ;;  %v612_v57 = vand.u32 2147483648, %v599_v46  ;;  %vm611_vm4 = vcmp.eq.f32.partialorder %v599_v46, 0.0 }
 0x13a   : > { %1065 = vrsqrt.f32 %v642_v48  ;;  %vm652_vm5 = vcmp.eq.f32.partialorder %v642_v48, inf  ;;  %vm654_vm6 = vcmp.eq.f32.partialorder %v642_v48, 0.0  ;;  %v655_v1 = vand.u32 2147483648, %v642_v48 }
 0x13b   : > { %1067 = vrsqrt.f32 %v685_v50  ;;  %vm695_vm7 = vcmp.eq.f32.partialorder %v685_v50, inf  ;;  %vm697_vm8 = vcmp.eq.f32.partialorder %v685_v50, 0.0  ;;  %v698_v4 = vand.u32 2147483648, %v685_v50 }
 0x13c   : > { %1069 = vrsqrt.f32 %v1537_v34 }
 0x13d   : > { %1071 = vrsqrt.f32 %v1539_v37 }
 0x13e   : > { %1073 = vrsqrt.f32 %v1543_v44 }
 0x146   : > { %v1064_v51 = vpop.eup %1063 }
 0x147   : > { %v1066_v52 = vpop.eup %1065  ;;  %v608_v55 = vmul.f32 %v1064_v51, %v599_v46 }
 0x148   : > { %v651_v58 = vmul.f32 %v1066_v52, %v642_v48  ;;  %v1068_v60 = vpop.eup %1067 }
 0x149   : > { %v610_v59 = vsel %vm609_vm3, %v599_v46, %v608_v55  ;;  %v694_v2 = vmul.f32 %v1068_v60, %v685_v50  ;;  %v1070_v11 = vpop.eup %1069 }
 0x14a   : > { %v613_v62 = vsel %vm611_vm4, %v612_v57, %v610_v59  ;;  %v653_v63 = vsel %vm652_vm5, %v642_v48, %v651_v58  ;;  %v1072_v12 = vpop.eup %1071  ;;  %v601_v14 = vmul.f32 %v1070_v11, %v1537_v34 }
 0x14b   : > { %v614_v0 = vadd.f32 1e-09, %v613_v62  ;;  %v656_v3 = vsel %vm654_vm6, %v655_v1, %v653_v63  ;;  %v696_v6 = vsel %vm695_vm7, %v685_v50, %v694_v2  ;;  %v1074_v15 = vpop.eup %1073  ;;  %v644_v17 = vmul.f32 %v1072_v12, %v1539_v37 }
 0x14c   : > { %v657_v5 = vadd.f32 1e-09, %v656_v3  ;;  %v699_v7 = vsel %vm697_vm8, %v698_v4, %v696_v6  ;;  %v603_v19 = vsel %vm602_vm10, %v1537_v34, %v601_v14  ;;  %v687_v24 = vmul.f32 %v1074_v15, %v1543_v44 }
 0x14d   : > { %v700_v9 = vadd.f32 1e-09, %v699_v7  ;;  %v606_v22 = vsel %vm604_vm12, %v605_v16, %v603_v19  ;;  %v646_v23 = vsel %vm645_vm11, %v1539_v37, %v644_v17 }
 0x14e   : > { %v689_v28 = vsel %vm688_vm14, %v1543_v44, %v687_v24 }
 0x14f   : > { %v692_v33 = vsel %vm690_vm15, %v691_v29, %v689_v28 }
 0x19d   : > { %v1546_v53 = vpop.xlane.xlu0 %715 }
 0x19e   : > { %v717_v56 = vsub.f32 %v1528_v45, %v1546_v53 }
 0x1a0   : > { %v718_v61 = vmul.f32 1.442695, %v717_v56 }
 0x1a2   : > { %1075 = vpow2.f32 %v718_v61 }
 0x1a3   : > { %1077 = vrcp.f32 %v614_v0 }
 0x1a4   : > { %1079 = vrcp.f32 %v657_v5 }
 0x1a5   : > { %v730_v10 = vpop.permute.xlu0 %729  ;;  %1081 = vrcp.f32 %v700_v9 }
 0x1a6   : > { %vm731_vm9 = vcmp.eq.s32.totalorder %v727_v8, %v730_v10 }
 0x1a7   : > { %v732_v13 = vsel %vm731_vm9, %v1528_v45, 0.0  ;;  %v648_v45 = vand.u32 2147483648, %v1539_v37 }
 0x1a8   : > { %v733_v27 = vsel %vm713_vm2, %v732_v13, 0.0 }
 0x1a9   : > { %v649_v26 = vsel %vm647_vm13, %v648_v45, %v646_v23 }
 0x1af   : > { %v1076_v18 = vpop.eup %1075 }
 0x1b0   : > { %v1078_v20 = vpop.eup %1077  ;;  %v720_v21 = vsel %vm713_vm2, %v1076_v18, 0.0 }
 0x1b1   : > { %721 = vadd.xlane.f32.xlu1 %v720_v21  ;;  %v616_v25 = vmul.f32 %v1078_v20, %v606_v22  ;;  %v1080_v30 = vpop.eup %1079 }
 0x1b2   : > { %v659_v32 = vmul.f32 %v1080_v30, %v649_v26  ;;  %v1082_v34 = vpop.eup %1081 }
 0x1b3   : > { %v617_v31 = vadd.f32 1e-09, %v616_v25  ;;  %v702_v36 = vmul.f32 %v1082_v34, %v692_v33 }
 0x1b4   : > { %v660_v35 = vadd.f32 1e-09, %v659_v32 }
 0x1b5   : > { %734 = vadd.xlane.f32.xlu1 %v733_v27  ;;  %1083 = vlog2.f32 %v617_v31  ;;  %v703_v37 = vadd.f32 1e-09, %v702_v36 }
 0x1b6   : > { %1085 = vlog2.f32 %v660_v35 }
 0x1b7   : > { %1087 = vlog2.f32 %v703_v37 }
 0x1c2   : > { %v1084_v38 = vpop.eup %1083 }
 0x1c3   : > { %v619_v39 = vmul.f32 0.6931472, %v1084_v38  ;;  %v1086_v40 = vpop.eup %1085 }
 0x1c4   : > { %v662_v42 = vmul.f32 0.6931472, %v1086_v40  ;;  %v1088_v43 = vpop.eup %1087 }
 0x1c5   : > { %v620_v41 = vmul.f32 0.4342945, %v619_v39  ;;  %v705_v47 = vmul.f32 0.6931472, %v1088_v43 }
 0x1c6   : > { %v663_v46 = vmul.f32 0.4342945, %v662_v42 }
 0x1c7   : > { %v621_v44 = vmul.f32 20.0, %v620_v41  ;;  %v706_v50 = vmul.f32 0.4342945, %v705_v47 }
 0x1c8   : > { %v664_v49 = vmul.f32 20.0, %v663_v46 }
 0x1c9   : > { %v622_v48 = vmul.f32 0.8, %v621_v44  ;;  %v707_v52 = vmul.f32 20.0, %v706_v50 }
 0x1ca   : > { %v665_v51 = vmul.f32 0.1, %v664_v49 }
 0x1cb   : > { %v708_v55 = vmul.f32 0.1, %v707_v52 }
 0x1cc   : > { %v666_v54 = vadd.f32 %v665_v51, %v622_v48 }
 0x1ce   : > { %v709_v56 = vadd.f32 %v708_v55, %v666_v54 }
 0x1d0   : > { %710 = vst.msk [vmem:[%s470_s17] sm:$0xff] %vm496_vm1, %v709_v56 }
 0x23a   : > { %v722_v57 = vpop.xlane.xlu1 %721 }
 0x23b   : > { %1089 = vlog2.f32 %v722_v57 }
 0x23e   : > { %v735_v60 = vpop.xlane.xlu1 %734 }
 0x248   : > { %v1090_v58 = vpop.eup %1089 }
 0x249   : > { %v724_v59 = vmul.f32 0.6931472, %v1090_v58 }
 0x24b   : > { %v725_v61 = vadd.f32 %v724_v59, %v1546_v53 }
 0x24d   : > { %v736_v62 = vsub.f32 %v725_v61, %v735_v60 }
 0x24f   : > { %737 = vst.msk [vmem:[%s474_s28] sm:$0xff] %vm496_vm1, %v736_v62 }
 0x250 PF: > { %s27_s8 = sadd.s32 1, %s1277_s8   ;;  %s1633_s27 = sld [smem:[#allocation13_spill]] }
 0x251   : > { %p24_p8 = scmp.ge.s32.totalorder %s27_s8, 12   ;;  %s1634_s28 = sld [smem:[#allocation14_spill]] }
 0x252   : > { %s1635_s29 = sld [smem:[#allocation15_spill]]  ;;  %s1637_s24 = smov %s1253_s25 }
 0x253   : > { %s1636_s30 = sld [smem:[#allocation16_spill]]  ;;  %s1638_s25 = smov %s1257_s26 }
 0x254   : > { %s1639_s26 = smov %s1399_s21  ;;  %26 = sbr.rel (!%p24_p8) target bundleno = 12 (0xc), region = 157 }
 0x259   :  { %771 = vsyncpa [#allocation4], 1 }
 0x25a   :  { %773 = vsyncpa [#allocation4 + $0x1], 1 }
 0x25b   :  { %774 = vsyncpa [#allocation6], 1 }
 0x25c   :  { %776 = vsyncpa [#allocation6 + $0x1], 1 }
 0x25d   :  { %777 = vsyncpa [#allocation9], 1 }
 0x25e   :  { %779 = vsyncpa [#allocation9 + $0x1], 1 }

</bundles_post_ra>
